<compile_context>
chip_gen: v7x
topology: tpu7x:2x2x1
jax: 0.10.0
libtpu: 0.0.40
codegen_flags: <defaults>
</compile_context>

<pallas_src>
import jax
import jax.numpy as jnp
from jax.experimental import pallas as pl
from jax.experimental.pallas import tpu as pltpu


def mlp_kernel(x_ref, w1_ref, b1_ref, w2_ref, b2_ref, o_ref):
    # fc1 -> ReLU -> fc2, all in-register; f32 accumulation on the MXU.
    h = jnp.dot(x_ref[...], w1_ref[...], preferred_element_type=jnp.float32)
    h = jnp.maximum(h + b1_ref[...].astype(jnp.float32), 0.0)   # bias + ReLU (VPU, f32)
    y = jnp.dot(h, w2_ref[...].astype(jnp.float32),
                preferred_element_type=jnp.float32) + b2_ref[...].astype(jnp.float32)
    o_ref[...] = y.astype(o_ref.dtype)


def _round_up(n, m):
    return ((n + m - 1) // m) * m


def mlp_forward(x, w1, b1, w2, b2, *, block_b=8192, vmem_limit_bytes=None):
    """y = relu(x @ w1 + b1) @ w2 + b2, tiled over the batch dimension.

    block_b sizing guide (VMEM pads the last dim to 128 lanes, so x + out
    tiles cost ~2 KiB/row double-buffered):
      * v5e : <=4096 under the default 16 MiB scoped limit; raise
              vmem_limit_bytes for 8192-16384.
      * v6e : 8192-16384 fits the 32 MiB default; raise vmem_limit_bytes to
              go larger (128 MiB physical).
      * v7x : keep <=8192 (64 MiB physical VMEM); grid_b >= 2 is enforced
              below so both TensorCores get work.
    """
    B, d_in = x.shape
    d_hidden = w1.shape[1]
    d_out = w2.shape[1]

    assert block_b % 8 == 0, "block_b must be a multiple of 8"

    # Batch tile: as large as the VMEM budget allows, but (a) no larger than
    # needed and (b) capped so grid_b >= 2 when B permits, so the 'parallel'
    # axis actually shards across v7x's two TensorCores.
    if B <= 16:
        tb = B                      # single full-extent tile (always legal)
    else:
        half = _round_up(pl.cdiv(B, 2), 8)   # aim for at least 2 grid steps
        tb = max(8, min(block_b, half, _round_up(B, 8)))
    grid_b = pl.cdiv(B, tb)

    vmem = pltpu.MemorySpace.VMEM

    cp_kwargs = dict(dimension_semantics=("parallel",))  # megacore split on v7x
    if vmem_limit_bytes is not None:
        cp_kwargs["vmem_limit_bytes"] = vmem_limit_bytes

    out = pl.pallas_call(
        mlp_kernel,
        out_shape=jax.ShapeDtypeStruct((B, d_out), x.dtype),
        grid=(grid_b,),
        in_specs=[
            # x: streamed per batch tile (double-buffered by Pallas).
            pl.BlockSpec((tb, d_in), lambda i: (i, 0), memory_space=vmem),
            # Weights / biases: constant block index -> loaded once, VMEM-resident.
            pl.BlockSpec((d_in, d_hidden), lambda i: (0, 0), memory_space=vmem),
            pl.BlockSpec((1, d_hidden), lambda i: (0, 0), memory_space=vmem),
            pl.BlockSpec((d_hidden, d_out), lambda i: (0, 0), memory_space=vmem),
            pl.BlockSpec((1, d_out), lambda i: (0, 0), memory_space=vmem),
        ],
        # Narrow (tb, 2) output block: masked 2-lane stores are negligible vs.
        # the 64x HBM write amplification the padded-slab approach had.
        out_specs=pl.BlockSpec((tb, d_out), lambda i: (i, 0), memory_space=vmem),
        compiler_params=pltpu.CompilerParams(**cp_kwargs),
    )(x, w1, b1, w2, b2)

    return out


def init_params(key, dtype=jnp.float32):
    # Deterministic init mimicking PyTorch nn.Linear default:
    # U(-1/sqrt(fan_in), 1/sqrt(fan_in)) for both weight and bias.
    k1, k2, k3, k4 = jax.random.split(key, 4)
    in1, out1 = 10, 20
    in2, out2 = 20, 2
    bound1 = 1.0 / jnp.sqrt(jnp.float32(in1))
    bound2 = 1.0 / jnp.sqrt(jnp.float32(in2))
    # Stored as (in_features, out_features) = PyTorch weight.T
    w1 = jax.random.uniform(k1, (in1, out1), jnp.float32, -bound1, bound1).astype(dtype)
    b1 = jax.random.uniform(k2, (1, out1), jnp.float32, -bound1, bound1).astype(dtype)
    w2 = jax.random.uniform(k3, (in2, out2), jnp.float32, -bound2, bound2).astype(dtype)
    b2 = jax.random.uniform(k4, (1, out2), jnp.float32, -bound2, bound2).astype(dtype)
    return w1, b1, w2, b2


if __name__ == "__main__":
    key = jax.random.PRNGKey(0)
    pkey, xkey = jax.random.split(key)
    w1, b1, w2, b2 = init_params(pkey)

    # Small demo batch; block_b=32 so the batch grid (pipelining + the
    # 'parallel' dimension semantics) is actually exercised (grid = 2).
    # Production use: leave block_b at its default (8192) for large B.
    B = 64
    x = jax.random.normal(xkey, (B, 10), jnp.float32)

    y = mlp_forward(x, w1, b1, w2, b2, block_b=32)
    y = jax.block_until_ready(y)

    # Reference check against plain JAX.
    y_ref = jnp.maximum(x @ w1 + b1, 0.0) @ w2 + b2
    assert y.shape == (B, 2)
    assert jnp.allclose(y, y_ref, atol=1e-5, rtol=1e-5)

    print("KERNEL_OK")
</pallas_src>

<mosaic_0001>
module attributes {stable_mosaic.version = 11 : i64} {
  func.func @mlp_kernel(%arg0: i32, %arg1: memref<32x10xf32, #tpu.memory_space<vmem>>, %arg2: memref<10x20xf32, #tpu.memory_space<vmem>>, %arg3: memref<1x20xf32, #tpu.memory_space<vmem>>, %arg4: memref<20x2xf32, #tpu.memory_space<vmem>>, %arg5: memref<1x2xf32, #tpu.memory_space<vmem>>, %arg6: memref<32x2xf32, #tpu.memory_space<vmem>>) attributes {dimension_semantics = [#tpu.dimension_semantics<parallel>], iteration_bounds = array<i64: 2>, scalar_prefetch = 0 : i64, scratch_operands = 0 : i64, tpu.core_type = #tpu.core_type<tc>, window_params = [{transform_indices = @transform_0, window_bounds = array<i64: 32, 10>}, {pipeline_mode = #tpu.pipeline_mode<synchronous>, transform_indices = @transform_1, window_bounds = array<i64: 10, 20>}, {pipeline_mode = #tpu.pipeline_mode<synchronous>, transform_indices = @transform_2, window_bounds = array<i64: 1, 20>}, {pipeline_mode = #tpu.pipeline_mode<synchronous>, transform_indices = @transform_3, window_bounds = array<i64: 20, 2>}, {pipeline_mode = #tpu.pipeline_mode<synchronous>, transform_indices = @transform_4, window_bounds = array<i64: 1, 2>}, {transform_indices = @transform_5, window_bounds = array<i64: 32, 2>}]} {
    %c0 = arith.constant 0 : index
    %c0_0 = arith.constant 0 : index
    %0 = vector.load %arg1[%c0, %c0_0] : memref<32x10xf32, #tpu.memory_space<vmem>>, vector<32x10xf32>
    %c0_1 = arith.constant 0 : index
    %c0_2 = arith.constant 0 : index
    %1 = vector.load %arg2[%c0_1, %c0_2] : memref<10x20xf32, #tpu.memory_space<vmem>>, vector<10x20xf32>
    %cst = arith.constant dense<0.000000e+00> : vector<32x20xf32>
    %2 = tpu.matmul %0, %1, %cst {dimension_numbers = #tpu.dot_dimension_numbers<[1], [0], [0], [1], [0, 0, 1, 1], [], []>} : vector<32x10xf32>, vector<10x20xf32>, vector<32x20xf32> -> vector<32x20xf32>
    %c0_3 = arith.constant 0 : index
    %c0_4 = arith.constant 0 : index
    %3 = vector.load %arg3[%c0_3, %c0_4] : memref<1x20xf32, #tpu.memory_space<vmem>>, vector<1x20xf32>
    %4 = vector.broadcast %3 : vector<1x20xf32> to vector<32x20xf32>
    %5 = arith.addf %2, %4 : vector<32x20xf32>
    %cst_5 = arith.constant 0.000000e+00 : f32
    %6 = vector.broadcast %cst_5 : f32 to vector<32x20xf32>
    %7 = arith.maximumf %5, %6 : vector<32x20xf32>
    %c0_6 = arith.constant 0 : index
    %c0_7 = arith.constant 0 : index
    %8 = vector.load %arg4[%c0_6, %c0_7] : memref<20x2xf32, #tpu.memory_space<vmem>>, vector<20x2xf32>
    %cst_8 = arith.constant dense<0.000000e+00> : vector<32x2xf32>
    %9 = tpu.matmul %7, %8, %cst_8 {dimension_numbers = #tpu.dot_dimension_numbers<[1], [0], [0], [1], [0, 0, 1, 1], [], []>} : vector<32x20xf32>, vector<20x2xf32>, vector<32x2xf32> -> vector<32x2xf32>
    %c0_9 = arith.constant 0 : index
    %c0_10 = arith.constant 0 : index
    %10 = vector.load %arg5[%c0_9, %c0_10] : memref<1x2xf32, #tpu.memory_space<vmem>>, vector<1x2xf32>
    %11 = vector.broadcast %10 : vector<1x2xf32> to vector<32x2xf32>
    %12 = arith.addf %9, %11 : vector<32x2xf32>
    %c0_11 = arith.constant 0 : index
    %c0_12 = arith.constant 0 : index
    %13 = vector.load %arg6[%c0_11, %c0_12] : memref<32x2xf32, #tpu.memory_space<vmem>>, vector<32x2xf32>
    tpu.vector_store %arg6[%c0_11, %c0_12], %12 {strides = array<i32>} : memref<32x2xf32, #tpu.memory_space<vmem>>, vector<32x2xf32>,
    return
  }
  func.func @transform_0(%arg0: i32) -> (i32, i32) {
    %c0_i32 = arith.constant 0 : i32
    %c0_i32_0 = arith.constant 0 : i32
    return %arg0, %c0_i32 : i32, i32
  }
  func.func @transform_1(%arg0: i32) -> (i32, i32) {
    %c0_i32 = arith.constant 0 : i32
    %c0_i32_0 = arith.constant 0 : i32
    %c0_i32_1 = arith.constant 0 : i32
    return %c0_i32, %c0_i32_0 : i32, i32
  }
  func.func @transform_2(%arg0: i32) -> (i32, i32) {
    %c0_i32 = arith.constant 0 : i32
    %c0_i32_0 = arith.constant 0 : i32
    %c0_i32_1 = arith.constant 0 : i32
    return %c0_i32, %c0_i32_0 : i32, i32
  }
  func.func @transform_3(%arg0: i32) -> (i32, i32) {
    %c0_i32 = arith.constant 0 : i32
    %c0_i32_0 = arith.constant 0 : i32
    %c0_i32_1 = arith.constant 0 : i32
    return %c0_i32, %c0_i32_0 : i32, i32
  }
  func.func @transform_4(%arg0: i32) -> (i32, i32) {
    %c0_i32 = arith.constant 0 : i32
    %c0_i32_0 = arith.constant 0 : i32
    %c0_i32_1 = arith.constant 0 : i32
    return %c0_i32, %c0_i32_0 : i32, i32
  }
  func.func @transform_5(%arg0: i32) -> (i32, i32) {
    %c0_i32 = arith.constant 0 : i32
    %c0_i32_0 = arith.constant 0 : i32
    return %arg0, %c0_i32 : i32, i32
  }
}

</mosaic_0001>

<bundles_post_ra>
// kernel: tpu_custom_call.1
= control target key start
LH: loop header
LB: loop body
LE: loop exit
PB: predicated region body
PF: predicated region fallthrough
CT: control target
= control target key end

     0   :  { %s636_s18 = smov 0   ;;  %s681_s0 = inlined_call_operand.vmem [shape: f32[64,10], index: 0, kind: input, shape index: {}]   ;;  %s682_s1 = inlined_call_operand.vmem [shape: f32[10,20], index: 1, kind: input, shape index: {}]   ;;  %s683_s2 = inlined_call_operand.vmem [shape: f32[1,20], index: 2, kind: input, shape index: {}]   ;;  %s684_s3 = inlined_call_operand.vmem [shape: f32[20,2], index: 3, kind: input, shape index: {}]   ;;  %s685_s4 = inlined_call_operand.vmem [shape: f32[1,2], index: 4, kind: input, shape index: {}]   ;;  %s686_s5 = inlined_call_operand.vmem [shape: f32[64,2], index: 5, kind: output, shape index: {}]  }
   0x1 LB: > { %s520_s19 = sadd.s32 4294967295, %s603_s18   ;;  %p524_p0 = scmp.ge.s32.totalorder %s603_s18, 1  ;;  %s603_s18 = sphi %s636_s18, %s15_s18  }
   0x2   : > { %p188_p1 = scmp.lt.s32.totalorder %s603_s18, 3 }
   0x4   : > { %p189_p2 = pnand %p524_p0, %p188_p1 }
   0x5   : > { %v232_v0 = vld [vmem:[%s682_s1] sm:$0xff] (!%p189_p2)  ;;  %v233_v1 = vld [vmem:[%s682_s1 + $0x8] sm:$0x3] (!%p189_p2)  ;;  %vm254_vm0 = vcmask (!%p189_p2), 1041408   ;;  %s525_s24 = sshll.u32 (!%p189_p2), %s520_s19, 2  ;;  %vm605_vm1 = vmmov (!%p189_p2), 1  }
   0x6   : > { %192 = sbr.rel (%p189_p2) target bundleno = 456 (0x1c8), region = 40  ;;  %v578_v2 = vpack.c.bf16 (!%p189_p2), %v233_v1, %v232_v0  ;;  %vm579_vm2 = vmpackc.low (!%p189_p2), %vm254_vm0, %vm605_vm1  ;;  %p217_p3 = scmp.lt.s32.totalorder (!%p189_p2), %s525_s24, 7  ;;  %vm241_vm3 = vcmask (!%p189_p2), 80896   ;;  %v347_v7 = vld [vmem:[%s684_s3] sm:$0xff] (!%p189_p2)  ;;  %v348_v8 = vld [vmem:[%s684_s3 + $0x8] sm:$0xff] (!%p189_p2)  ;;  %vm370_vm4 = vcmask (!%p189_p2), 1043456  }
   0x7   : > { %v584_v9 = vpack.c.bf16 (!%p189_p2), %v348_v8, %v347_v7  ;;  %v349_v10 = vld [vmem:[%s684_s3 + $0x10] sm:$0xf] (!%p189_p2)  ;;  %v529_v11 = vld [vmem:[%s683_s2] ss:$0 sm:$0xff] (!%p189_p2)  ;;  %vm357_vm5 = vcmask (!%p189_p2), 162816   ;;  %vm459_vm6 = vcmask (!%p189_p2), 15360  }
   0x8   : > { %580 = vmatprep.subr.msk.bf16.mxu0 (!%p189_p2), %vm579_vm2, %v578_v2  ;;  %v535_v24 = vld [vmem:[%s685_s4] ss:$0 sm:$0xff] (!%p189_p2) }
   0x9   : > { %583 = vmatpush3.bf16.msk.msra.mxu0 (!%p189_p2), %vm579_vm2, %v578_v2  ;;  %585 = vmatprep.subr.bf16.mxu1 (!%p189_p2), %v584_v9 }
   0xa   : > { %587 = vmatpush3.bf16.msra.mxu1 (!%p189_p2), %v584_v9 }
   0xb   : > { %570 = vmatprep.subr.msk.mxu1 (!%p189_p2), %vm370_vm4, %v349_v10 }
   0xd   : > { %s688_s24 = smov (!%p217_p3, %s525_s24), 7 }
   0xe   : > { %s526_s25 = sshll.u32 %s688_s24, 3  ;;  %571 = vmatpush3.msk.msra.mxu1 %vm370_vm4, %v349_v10 }
   0xf   : > { %s220_s28 = scalar_lea.vmem %s681_s0, %s526_s25  ;;  %s226_s16 = scalar_lea.vmem %s686_s5, %s526_s25 }
  0x10   : > { %v228_v3 = vld [vmem:[%s220_s28] sm:$0xff]  ;;  %v229_v4 = vld [vmem:[%s220_s28 + $0x8] sm:$0xff]  ;;  %v230_v5 = vld [vmem:[%s220_s28 + $0x10] sm:$0xff] }
  0x11   : > { %560 = vmatprep.mubr.msk.f32.mxu0 %vm241_vm3, %v228_v3  ;;  %v231_v6 = vld [vmem:[%s220_s28 + $0x18] sm:$0xff] }
  0x12   : > { %561 = vmatmul.mubr.msk.f32.vlgmr.msra.gmra.mrb[0].mxu0 %vm241_vm3, %v229_v4 }
  0x13   : > { %563 = vmatprep.mubr.msk.f32.mxu0 %vm241_vm3, %v230_v5 }
  0x16   : > { %564 = vmatmul.mubr.msk.f32.gmra.mrb[2].mxu0 %vm241_vm3, %v231_v6 }
  0xe5   : > { %v562_v12 = vpop.f32.mrb[0].mxu0 }
  0xe6   : > { %v330_v13 = vadd.f32 %v562_v12, %v529_v11  ;;  %v324_v14 = vpop.f32.mrb[1].mxu0 }
  0xe7   : > { %v325_v15 = vadd.f32 %v529_v11, %v324_v14 }
  0xe8   : > { %v344_v18 = vmax.f32 %v330_v13, 0.0 }
  0xe9   : > { %v343_v16 = vmax.f32 %v325_v15, 0.0  ;;  %v565_v17 = vpop.f32.mrb[2].mxu0 }
  0xea   : > { %v340_v19 = vadd.f32 %v565_v17, %v529_v11  ;;  %v334_v20 = vpop.f32.mrb[3].mxu0 }
  0xeb   : > { %v335_v21 = vadd.f32 %v529_v11, %v334_v20  ;;  %572 = vmatprep.mubr.msk.f32.mxu1 %vm357_vm5, %v343_v16 }
  0xec   : > { %573 = vmatmul.mubr.msk.f32.vlgmr.msra.gmra.mrb[0].mxu1 %vm357_vm5, %v344_v18  ;;  %v346_v23 = vmax.f32 %v340_v19, 0.0 }
  0xed   : > { %v345_v22 = vmax.f32 %v335_v21, 0.0 }
  0xef   : > { %575 = vmatprep.mubr.msk.f32.mxu1 %vm357_vm5, %v345_v22 }
  0xf0   : > { %576 = vmatmul.mubr.msk.f32.gmra.mrb[2].mxu1 %vm357_vm5, %v346_v23 }
 0x1bf   : > { %v574_v25 = vpop.f32.mrb[0].mxu1 }
 0x1c0   : > { %v440_v26 = vpop.f32.mrb[1].mxu1  ;;  %v446_v28 = vadd.f32 %v574_v25, %v535_v24 }
 0x1c1   : > { %v441_v27 = vadd.f32 %v535_v24, %v440_v26 }
 0x1c2   : > { %461 = vst.msk [vmem:[%s226_s16 + $0x8] sm:$0xff] %vm459_vm6, %v446_v28 }
 0x1c3   : > { %460 = vst.msk [vmem:[%s226_s16] sm:$0xff] %vm459_vm6, %v441_v27  ;;  %v577_v29 = vpop.f32.mrb[2].mxu1 }
 0x1c4   : > { %v450_v30 = vpop.f32.mrb[3].mxu1  ;;  %v456_v32 = vadd.f32 %v577_v29, %v535_v24 }
 0x1c5   : > { %v451_v31 = vadd.f32 %v535_v24, %v450_v30 }
 0x1c6   : > { %463 = vst.msk [vmem:[%s226_s16 + $0x18] sm:$0xff] %vm459_vm6, %v456_v32 }
 0x1c7   : > { %462 = vst.msk [vmem:[%s226_s16 + $0x10] sm:$0xff] %vm459_vm6, %v451_v31 }
 0x1c8 PF: > { %s15_s18 = sadd.s32 1, %s603_s18  }
 0x1c9   : > { %p12_p4 = scmp.ge.s32.totalorder %s15_s18, 4  }
 0x1cb   :  { %14 = sbr.rel (!%p12_p4) target bundleno = 1 (0x1), region = 70 }

</bundles_post_ra>
